<compile_context>
chip_gen: v5e
topology: v5e:2x2
jax: 0.10.0
libtpu: 0.0.40
codegen_flags: <defaults>
</compile_context>

<pallas_src>
import functools
import math

import jax
import jax.numpy as jnp
from jax.experimental import pallas as pl
from jax.experimental.pallas import tpu as pltpu


_INV_SQRT2 = 1.0 / math.sqrt(2.0)
_GRID_STEP_OVERHEAD_S = 0.35e-6          # measured per-grid-step overhead
_RT_CANDIDATES = (1024, 768, 512, 384, 256, 192, 128, 96, 64, 32, 16, 8)


def _round_up(x, m):
    return ((x + m - 1) // m) * m


# --------------------------------------------------------------------------- #
# Kernel                                                                      #
# --------------------------------------------------------------------------- #
def ffn_kernel(x_ref, w1_ref, b1_ref, w2_ref, b2_ref, o_ref, acc_ref):
    """Grid point (i, j):
         h      = gelu(x_i @ W1[:, j*tf:(j+1)*tf] + b1_j)   (f32 on the MXU)
         acc_i += h @ W2[j*tf:(j+1)*tf, :]                   (f32 scratch)
       On the last ffn tile, add b2 and emit the lane-dense output row tile."""
    j = pl.program_id(1)

    @pl.when(j == 0)
    def _():
        acc_ref[...] = jnp.zeros_like(acc_ref)

    # lin1 partial (MXU, f32 accumulation) + bias
    h = jnp.dot(x_ref[...], w1_ref[...], preferred_element_type=jnp.float32)
    h = h + b1_ref[...].astype(jnp.float32)          # (1, tf) broadcasts

    # exact (erf) GELU, matching torch.nn.GELU() default semantics
    h = 0.5 * h * (1.0 + jax.lax.erf(h * _INV_SQRT2))

    # lin2 partial in the weight dtype (bf16 keeps the full MXU rate), f32 acc
    acc_ref[...] += jnp.dot(h.astype(w2_ref.dtype), w2_ref[...],
                            preferred_element_type=jnp.float32)

    @pl.when(j == pl.num_programs(1) - 1)
    def _():
        o_ref[...] = (acc_ref[...] + b2_ref[...].astype(jnp.float32)
                      ).astype(o_ref.dtype)


# --------------------------------------------------------------------------- #
# Per-generation configuration and tile selection                             #
# --------------------------------------------------------------------------- #
@functools.lru_cache(maxsize=None)
def _hw_config():
    """(row_tile_default, ffn_tile_default, vmem_cap_bytes, peak_flops, hbm_bw)."""
    kind = ""
    try:
        kind = jax.devices()[0].device_kind.lower()
    except Exception:
        pass
    vmem_phys = 128 << 20
    try:
        vmem_phys = int(pltpu.get_tpu_info().vmem_capacity_bytes)
    except Exception:
        if "v7" in kind:
            vmem_phys = 64 << 20
    # Scoped-VMEM cap: ~85% of physical minus headroom for compiler scratch.
    vmem_cap = max(16 << 20, int(vmem_phys * 0.85) - (4 << 20))
    if "v7" in kind or vmem_phys <= (64 << 20):
        # v7x: 64 MiB VMEM is the binding constraint; ridge ~311 flops/byte.
        return 512, 512, vmem_cap, 996e12, 3.2e12
    if "v5" in kind:
        # v5e: ridge ~240 flops/byte -> rt=512 gives comfortable margin.
        return 512, 512, vmem_cap, 197e12, 0.82e12
    # v6e (and default for other 128-MiB chips): ridge ~640 flops/byte.
    return 1024, 512, vmem_cap, 918e12, 1.4e12


def _pick_ffn_tile(ffn_dim, ffn_tile_cap):
    """Largest divisor of ffn_dim <= cap, preferring lane-dense multiples of 128."""
    tf_max = max(1, min(ffn_tile_cap, ffn_dim))
    best = 1
    for cand in range(tf_max, 0, -1):
        if ffn_dim % cand == 0:
            if cand % 128 == 0:
                return cand
            if best == 1:
                best = cand
    return best


def _vmem_footprint(rt, tf, hidden, x_item, w_item, o_item):
    """Actual VMEM bytes: double-buffered blocks (counted once), f32 accumulator
    scratch, and the (rt, tf) f32 GELU intermediate."""
    return (2 * rt * hidden * x_item                      # x tile
            + 2 * rt * hidden * o_item                    # out tile
            + 2 * (hidden * tf + tf) * w_item             # W1 + b1 tiles
            + 2 * (tf * hidden + hidden) * w_item         # W2 + b2 tiles
            + rt * hidden * 4                             # f32 accumulator
            + rt * tf * 4)                                # f32 h intermediate


def _select_row_tile(rows8, hidden, tf, ffn_dim, x_item, w_item, o_item,
                     row_tile_cap, vmem_cap, peak_flops, hbm_bw):
    """Roofline-based row-tile choice: balances W1/W2 re-stream bytes (per row
    tile), MXU flops incl. padding waste, and per-grid-step overhead; only
    considers tiles whose footprint fits the scoped-VMEM cap."""
    max_rt = max(8, min(_round_up(row_tile_cap, 8), rows8))
    cands = sorted({max_rt, *(c for c in _RT_CANDIDATES if c <= max_rt)},
                   reverse=True)
    scored = []
    for rt in cands:
        rows_padded = _round_up(rows8, rt)
        n_tiles = rows_padded // rt
        n_steps = n_tiles * (ffn_dim // tf)
        flops = 4.0 * rows_padded * hidden * ffn_dim
        hbm_bytes = (rows_padded * hidden * (x_item + o_item)
                     + n_tiles * ((hidden * ffn_dim + ffn_dim)
                                  + (ffn_dim * hidden + hidden)) * w_item)
        t = max(flops / peak_flops, hbm_bytes / hbm_bw) \
            + n_steps * _GRID_STEP_OVERHEAD_S
        fits = _vmem_footprint(rt, tf, hidden, x_item, w_item, o_item) <= vmem_cap
        scored.append((rt, rows_padded, t, fits))
    feasible = [s for s in scored if s[3]] or scored       # best effort fallback
    best_t = min(s[2] for s in feasible)
    for rt, rows_padded, t, _ in feasible:                 # descending rt order
        if t <= best_t * 1.001:
            return rt, rows_padded
    return feasible[-1][0], feasible[-1][1]                # unreachable guard


# --------------------------------------------------------------------------- #
# Parameter prep + forward                                                     #
# --------------------------------------------------------------------------- #
def prepare_ffn_params(w1, b1, w2, b2, *, dtype=None):
    """One-time prep (do this OUTSIDE the jitted forward): transpose PyTorch
    nn.Linear weights ([out, in] -> [in, out]) and make biases 2-D.  Pass
    dtype=jnp.bfloat16 for the intended production path on v5e/v6e/v7x."""
    w1_t = jnp.asarray(w1).T                 # [hidden, ffn]
    w2_t = jnp.asarray(w2).T                 # [ffn, hidden]
    b1_2d = jnp.asarray(b1).reshape(1, -1)   # [1, ffn]
    b2_2d = jnp.asarray(b2).reshape(1, -1)   # [1, hidden]
    if dtype is not None:
        w1_t, w2_t = w1_t.astype(dtype), w2_t.astype(dtype)
        b1_2d, b2_2d = b1_2d.astype(dtype), b2_2d.astype(dtype)
    return w1_t, b1_2d, w2_t, b2_2d


@functools.partial(jax.jit, static_argnames=("row_tile", "ffn_tile"))
def ffn_forward(x, w1_t, b1_2d, w2_t, b2_2d, *, row_tile=None, ffn_tile=None):
    """x: [batch, seq, hidden]; params from prepare_ffn_params().
    row_tile / ffn_tile default to per-chip-generation choices."""
    batch, seq, hidden = x.shape
    assert w1_t.shape[0] == hidden
    ffn_dim = w1_t.shape[1]
    assert w2_t.shape == (ffn_dim, hidden)
    assert b1_2d.shape == (1, ffn_dim) and b2_2d.shape == (1, hidden)

    rows = batch * seq
    rows8 = _round_up(rows, 8)

    hw_rt, hw_tf, vmem_cap, peak_flops, hbm_bw = _hw_config()
    row_tile_cap = hw_rt if row_tile is None else row_tile
    ffn_tile_cap = hw_tf if ffn_tile is None else ffn_tile

    x_item = x.dtype.itemsize
    w_item = w1_t.dtype.itemsize
    o_item = x.dtype.itemsize

    # ffn tile: largest divisor of ffn_dim <= cap (prefer lane-dense mult of
    # 128); shrink only if even the smallest row tile cannot fit the VMEM cap.
    tf = _pick_ffn_tile(ffn_dim, ffn_tile_cap)
    while tf > 8 and _vmem_footprint(8, tf, hidden, x_item, w_item, o_item) > vmem_cap:
        new_tf = _pick_ffn_tile(ffn_dim, max(8, tf // 2))
        if new_tf >= tf:
            break
        tf = new_tf

    rt, rows_padded = _select_row_tile(
        rows8, hidden, tf, ffn_dim, x_item, w_item, o_item,
        row_tile_cap, vmem_cap, peak_flops, hbm_bw)

    x2d = x.reshape(rows, hidden)
    if rows_padded != rows:
        x2d = jnp.pad(x2d, ((0, rows_padded - rows), (0, 0)))

    grid = (rows_padded // rt, ffn_dim // tf)
    n_row_tiles = grid[0]

    # Advisory cost hint: weights are re-streamed once per row tile.
    cost = pl.CostEstimate(
        flops=4 * rows_padded * hidden * ffn_dim,
        transcendentals=rows_padded * ffn_dim,
        bytes_accessed=int(
            rows_padded * hidden * (x_item + o_item)
            + n_row_tiles * ((hidden * ffn_dim + ffn_dim)
                             + (ffn_dim * hidden + hidden)) * w_item),
    )

    # Scoped VMEM: actual footprint + small margin, capped per generation.
    vmem_needed = _vmem_footprint(rt, tf, hidden, x_item, w_item, o_item)
    vmem_limit = int(max(min(vmem_cap, vmem_needed + (2 << 20)),
                         min(vmem_cap, 16 << 20)))

    out2d = pl.pallas_call(
        ffn_kernel,
        out_shape=jax.ShapeDtypeStruct((rows_padded, hidden), x.dtype),
        grid_spec=pltpu.PrefetchScalarGridSpec(
            num_scalar_prefetch=0,
            grid=grid,
            in_specs=[
                pl.BlockSpec((rt, hidden), lambda i, j: (i, 0)),   # x row tile
                pl.BlockSpec((hidden, tf), lambda i, j: (0, j)),   # W1 slab
                pl.BlockSpec((1, tf), lambda i, j: (0, j)),        # b1 slab
                pl.BlockSpec((tf, hidden), lambda i, j: (j, 0)),   # W2 slab
                pl.BlockSpec((1, hidden), lambda i, j: (0, 0)),    # b2 (resident)
            ],
            # Same output block across j -> accumulator-resident over ffn axis.
            out_specs=pl.BlockSpec((rt, hidden), lambda i, j: (i, 0)),
            scratch_shapes=[pltpu.VMEM((rt, hidden), jnp.float32)],
        ),
        compiler_params=pltpu.CompilerParams(
            dimension_semantics=("parallel", "arbitrary"),
            vmem_limit_bytes=vmem_limit,
        ),
        cost_estimate=cost,
    )(x2d, w1_t, b1_2d, w2_t, b2_2d)

    if rows_padded != rows:
        out2d = out2d[:rows]
    return out2d.reshape(batch, seq, hidden)


# --------------------------------------------------------------------------- #
# Reference + demo                                                             #
# --------------------------------------------------------------------------- #
def init_linear_params(key, in_features, out_features):
    """Deterministic init mimicking torch.nn.Linear.reset_parameters():
    kaiming-uniform weight (bound = 1/sqrt(fan_in)) and uniform bias."""
    kw, kb = jax.random.split(key)
    bound = 1.0 / math.sqrt(in_features)
    w = jax.random.uniform(kw, (out_features, in_features),
                           minval=-bound, maxval=bound, dtype=jnp.float32)
    b = jax.random.uniform(kb, (out_features,),
                           minval=-bound, maxval=bound, dtype=jnp.float32)
    return w, b


def _reference(x, w1, b1, w2, b2):
    h = x @ w1.T + b1
    h = jax.nn.gelu(h, approximate=False)
    return h @ w2.T + b2


if __name__ == "__main__":
    key = jax.random.PRNGKey(0)

    # --- check 1: module-sized f32 demo (batch=2, seq=8, hidden=32, ffn=64) --
    batch, seq, hidden_dim, ffn_dim = 2, 8, 32, 64
    kx, k1, k2, key = jax.random.split(key, 4)
    x = jax.random.normal(kx, (batch, seq, hidden_dim), dtype=jnp.float32)
    w1, b1 = init_linear_params(k1, hidden_dim, ffn_dim)   # lin1: hidden -> ffn
    w2, b2 = init_linear_params(k2, ffn_dim, hidden_dim)   # lin2: ffn -> hidden

    params = prepare_ffn_params(w1, b1, w2, b2)
    out = jax.block_until_ready(ffn_forward(x, *params))
    ref = _reference(x, w1, b1, w2, b2)
    assert out.shape == (batch, seq, hidden_dim)
    assert jnp.allclose(out, ref, atol=2e-5, rtol=2e-5)

    # --- check 2: ragged rows + multi-tile accumulation over the ffn axis ----
    batch2, seq2, hidden2, ffn2 = 3, 5, 32, 256
    kx2, k3, k4, key = jax.random.split(key, 4)
    x2 = jax.random.normal(kx2, (batch2, seq2, hidden2), dtype=jnp.float32)
    w1b, b1b = init_linear_params(k3, hidden2, ffn2)
    w2b, b2b = init_linear_params(k4, ffn2, hidden2)

    params2 = prepare_ffn_params(w1b, b1b, w2b, b2b)
    out2 = jax.block_until_ready(
        ffn_forward(x2, *params2, row_tile=8, ffn_tile=128))
    ref2 = _reference(x2, w1b, b1b, w2b, b2b)
    assert out2.shape == (batch2, seq2, hidden2)
    assert jnp.allclose(out2, ref2, atol=2e-5, rtol=2e-5)

    # --- check 3: bf16 operand path (intended production config) -------------
    batch3, seq3, hidden3, ffn3 = 2, 64, 128, 512
    kx3, k5, k6, key = jax.random.split(key, 4)
    x3 = jax.random.normal(kx3, (batch3, seq3, hidden3), dtype=jnp.float32)
    w1c, b1c = init_linear_params(k5, hidden3, ffn3)
    w2c, b2c = init_linear_params(k6, ffn3, hidden3)

    params3 = prepare_ffn_params(w1c, b1c, w2c, b2c, dtype=jnp.bfloat16)
    out3 = jax.block_until_ready(ffn_forward(x3.astype(jnp.bfloat16), *params3))
    ref3 = _reference(x3, w1c, b1c, w2c, b2c)
    assert out3.shape == (batch3, seq3, hidden3)
    assert jnp.allclose(out3.astype(jnp.float32), ref3, atol=5e-2, rtol=5e-2)

    print("KERNEL_OK")
</pallas_src>

<mosaic_0001>
module attributes {stable_mosaic.version = 11 : i64} {
  func.func @ffn_kernel(%arg0: i32, %arg1: i32, %arg2: memref<16x32xf32, #tpu.memory_space<vmem>>, %arg3: memref<32x64xf32, #tpu.memory_space<vmem>>, %arg4: memref<1x64xf32, #tpu.memory_space<vmem>>, %arg5: memref<64x32xf32, #tpu.memory_space<vmem>>, %arg6: memref<1x32xf32, #tpu.memory_space<vmem>>, %arg7: memref<16x32xf32, #tpu.memory_space<vmem>>, %arg8: memref<16x32xf32, #tpu.memory_space<vmem>>) attributes {dimension_semantics = [#tpu.dimension_semantics<parallel>, #tpu.dimension_semantics<arbitrary>], iteration_bounds = array<i64: 1, 1>, scalar_prefetch = 0 : i64, scratch_operands = 1 : i64, tpu.core_type = #tpu.core_type<tc>, window_params = [{transform_indices = @transform_0, window_bounds = array<i64: 16, 32>}, {transform_indices = @transform_1, window_bounds = array<i64: 32, 64>}, {transform_indices = @transform_2, window_bounds = array<i64: 1, 64>}, {transform_indices = @transform_3, window_bounds = array<i64: 64, 32>}, {pipeline_mode = #tpu.pipeline_mode<synchronous>, transform_indices = @transform_4, window_bounds = array<i64: 1, 32>}, {transform_indices = @transform_5, window_bounds = array<i64: 16, 32>}]} {
    %c0_i32 = arith.constant 0 : i32
    %0 = arith.cmpi eq, %arg1, %c0_i32 : i32
    %1 = arith.extui %0 : i1 to i32
    %c0_i32_0 = arith.constant 0 : i32
    %2 = arith.cmpi ne, %1, %c0_i32_0 : i32
    scf.if %2 {
      %cst_18 = arith.constant 0.000000e+00 : f32
      %25 = vector.broadcast %cst_18 : f32 to vector<16x32xf32>
      %c0_19 = arith.constant 0 : index
      %c0_20 = arith.constant 0 : index
      %26 = vector.load %arg8[%c0_19, %c0_20] : memref<16x32xf32, #tpu.memory_space<vmem>>, vector<16x32xf32>
      tpu.vector_store %arg8[%c0_19, %c0_20], %25 {strides = array<i32>} : memref<16x32xf32, #tpu.memory_space<vmem>>, vector<16x32xf32>,
    } else {
    }
    %c0 = arith.constant 0 : index
    %c0_1 = arith.constant 0 : index
    %3 = vector.load %arg2[%c0, %c0_1] : memref<16x32xf32, #tpu.memory_space<vmem>>, vector<16x32xf32>
    %c0_2 = arith.constant 0 : index
    %c0_3 = arith.constant 0 : index
    %4 = vector.load %arg3[%c0_2, %c0_3] : memref<32x64xf32, #tpu.memory_space<vmem>>, vector<32x64xf32>
    %cst = arith.constant dense<0.000000e+00> : vector<16x64xf32>
    %5 = tpu.matmul %3, %4, %cst {dimension_numbers = #tpu.dot_dimension_numbers<[1], [0], [0], [1], [0, 0, 1, 1], [], []>} : vector<16x32xf32>, vector<32x64xf32>, vector<16x64xf32> -> vector<16x64xf32>
    %c0_4 = arith.constant 0 : index
    %c0_5 = arith.constant 0 : index
    %6 = vector.load %arg4[%c0_4, %c0_5] : memref<1x64xf32, #tpu.memory_space<vmem>>, vector<1x64xf32>
    %7 = vector.broadcast %6 : vector<1x64xf32> to vector<16x64xf32>
    %8 = arith.addf %5, %7 : vector<16x64xf32>
    %cst_6 = arith.constant 5.000000e-01 : f32
    %9 = vector.broadcast %cst_6 : f32 to vector<16x64xf32>
    %10 = arith.mulf %9, %8 : vector<16x64xf32>
    %cst_7 = arith.constant 0.707106769 : f32
    %11 = vector.broadcast %cst_7 : f32 to vector<16x64xf32>
    %12 = arith.mulf %8, %11 : vector<16x64xf32>
    %13 = math.erf %12 : vector<16x64xf32>
    %cst_8 = arith.constant 1.000000e+00 : f32
    %14 = vector.broadcast %cst_8 : f32 to vector<16x64xf32>
    %15 = arith.addf %14, %13 : vector<16x64xf32>
    %16 = arith.mulf %10, %15 : vector<16x64xf32>
    %c0_9 = arith.constant 0 : index
    %c0_10 = arith.constant 0 : index
    %17 = vector.load %arg8[%c0_9, %c0_10] : memref<16x32xf32, #tpu.memory_space<vmem>>, vector<16x32xf32>
    %c0_11 = arith.constant 0 : index
    %c0_12 = arith.constant 0 : index
    %18 = vector.load %arg5[%c0_11, %c0_12] : memref<64x32xf32, #tpu.memory_space<vmem>>, vector<64x32xf32>
    %cst_13 = arith.constant dense<0.000000e+00> : vector<16x32xf32>
    %19 = tpu.matmul %16, %18, %cst_13 {dimension_numbers = #tpu.dot_dimension_numbers<[1], [0], [0], [1], [0, 0, 1, 1], [], []>} : vector<16x64xf32>, vector<64x32xf32>, vector<16x32xf32> -> vector<16x32xf32>
    %20 = arith.addf %17, %19 : vector<16x32xf32>
    %c0_14 = arith.constant 0 : index
    %c0_15 = arith.constant 0 : index
    %21 = vector.load %arg8[%c0_14, %c0_15] : memref<16x32xf32, #tpu.memory_space<vmem>>, vector<16x32xf32>
    tpu.vector_store %arg8[%c0_14, %c0_15], %20 {strides = array<i32>} : memref<16x32xf32, #tpu.memory_space<vmem>>, vector<16x32xf32>,
    %c0_i32_16 = arith.constant 0 : i32
    %22 = arith.cmpi eq, %arg1, %c0_i32_16 : i32
    %23 = arith.extui %22 : i1 to i32
    %c0_i32_17 = arith.constant 0 : i32
    %24 = arith.cmpi ne, %23, %c0_i32_17 : i32
    scf.if %24 {
      %c0_18 = arith.constant 0 : index
      %c0_19 = arith.constant 0 : index
      %25 = vector.load %arg8[%c0_18, %c0_19] : memref<16x32xf32, #tpu.memory_space<vmem>>, vector<16x32xf32>
      %c0_20 = arith.constant 0 : index
      %c0_21 = arith.constant 0 : index
      %26 = vector.load %arg6[%c0_20, %c0_21] : memref<1x32xf32, #tpu.memory_space<vmem>>, vector<1x32xf32>
      %27 = vector.broadcast %26 : vector<1x32xf32> to vector<16x32xf32>
      %28 = arith.addf %25, %27 : vector<16x32xf32>
      %c0_22 = arith.constant 0 : index
      %c0_23 = arith.constant 0 : index
      %29 = vector.load %arg7[%c0_22, %c0_23] : memref<16x32xf32, #tpu.memory_space<vmem>>, vector<16x32xf32>
      tpu.vector_store %arg7[%c0_22, %c0_23], %28 {strides = array<i32>} : memref<16x32xf32, #tpu.memory_space<vmem>>, vector<16x32xf32>,
    } else {
    }
    return
  }
  func.func @transform_0(%arg0: i32, %arg1: i32) -> (i32, i32) {
    %c0_i32 = arith.constant 0 : i32
    %c0_i32_0 = arith.constant 0 : i32
    return %arg0, %c0_i32 : i32, i32
  }
  func.func @transform_1(%arg0: i32, %arg1: i32) -> (i32, i32) {
    %c0_i32 = arith.constant 0 : i32
    %c0_i32_0 = arith.constant 0 : i32
    return %c0_i32, %arg1 : i32, i32
  }
  func.func @transform_2(%arg0: i32, %arg1: i32) -> (i32, i32) {
    %c0_i32 = arith.constant 0 : i32
    %c0_i32_0 = arith.constant 0 : i32
    return %c0_i32, %arg1 : i32, i32
  }
  func.func @transform_3(%arg0: i32, %arg1: i32) -> (i32, i32) {
    %c0_i32 = arith.constant 0 : i32
    %c0_i32_0 = arith.constant 0 : i32
    return %arg1, %c0_i32 : i32, i32
  }
  func.func @transform_4(%arg0: i32, %arg1: i32) -> (i32, i32) {
    %c0_i32 = arith.constant 0 : i32
    %c0_i32_0 = arith.constant 0 : i32
    %c0_i32_1 = arith.constant 0 : i32
    return %c0_i32, %c0_i32_0 : i32, i32
  }
  func.func @transform_5(%arg0: i32, %arg1: i32) -> (i32, i32) {
    %c0_i32 = arith.constant 0 : i32
    %c0_i32_0 = arith.constant 0 : i32
    return %arg0, %c0_i32 : i32, i32
  }
}

</mosaic_0001>

<bundles_post_ra>
// kernel: ffn_forward.1
= control target key start
LH: loop header
LB: loop body
LE: loop exit
PB: predicated region body
PF: predicated region fallthrough
CT: control target
= control target key end

     0   :  { %s420_s0 = inlined_call_operand.vmem [shape: f32[16,32], index: 0, kind: input, shape index: {}]   ;;  %s421_s1 = inlined_call_operand.vmem [shape: f32[32,64], index: 1, kind: input, shape index: {}]   ;;  %s422_s2 = inlined_call_operand.vmem [shape: f32[1,64], index: 2, kind: input, shape index: {}]   ;;  %s423_s3 = inlined_call_operand.vmem [shape: f32[64,32], index: 3, kind: input, shape index: {}]   ;;  %s424_s4 = inlined_call_operand.vmem [shape: f32[1,32], index: 4, kind: input, shape index: {}]   ;;  %s425_s5 = inlined_call_operand.hbm [shape: f32[16,32], index: 5, kind: output, shape index: {}]  }
   0x1   :  { %v33_v0 = vld [vmem:[%s421_s1 + $0x18] sm:$0xff]  ;;  %v32_v1 = vld [vmem:[%s421_s1 + $0x10] sm:$0xff]  ;;  %v31_v2 = vld [vmem:[%s421_s1 + $0x8] sm:$0xff] }
   0x2   :  { %57 = vmatpush.msra.mxu0 %v33_v0  ;;  %237 = vmatpush.msra.mxu3 %v33_v0 }
   0x3   :  { %10 = vsyncpa [#allocation4], 0  ;;  %v30_v3 = vld [vmem:[%s421_s1] sm:$0xff]  ;;  %vm25_vm0 = vcmask 261120   ;;  %v29_v5 = vld [vmem:[%s420_s0 + $0x8] sm:$0xff]  ;;  %v285_v56 = vmov 0.0  }
   0x4   :  { %58 = vmatpush.msra.mxu0 %v32_v1  ;;  %238 = vmatpush.msra.mxu3 %v32_v1  ;;  %v28_v4 = vld [vmem:[%s420_s0] sm:$0xff]  ;;  %v165_v14 = vld [vmem:[%s423_s3 + $0x38] sm:$0xff]  ;;  %v164_v18 = vld [vmem:[%s423_s3 + $0x30] sm:$0xff]  ;;  %26 = vst.msk [vmem:[#allocation2] sm:$0xff] %vm25_vm0, %v285_v56  ;;  %vm166_vm9 = vcmask 523264   ;;  %s286_s21 = smov [#allocation3]  }
   0x5   :  { %v253_v6 = vld [vmem:[%s422_s2] ss:$0 sm:$0xff]  ;;  %181 = vmatpush.msra.mxu1 %v165_v14  ;;  %241 = vmatpush.msra.mxu2 %v165_v14  ;;  %v163_v22 = vld [vmem:[%s423_s3 + $0x28] sm:$0xff]  ;;  %v161_v31 = vld [vmem:[%s423_s3 + $0x18] sm:$0xff]  ;;  %27 = vst.msk [vmem:[#allocation2 + $0x8] sm:$0xff] %vm25_vm0, %v285_v56  ;;  %s217_s22 = sshll.u32 %s286_s21, 4  ;;  %s218_s22 = int_to_ptr.vmem [resolvable:$true] %s217_s22 }
   0x6   :  { %59 = vmatpush.msra.mxu0 %v31_v2  ;;  %239 = vmatpush.msra.mxu3 %v31_v2  ;;  %v162_v26 = vld [vmem:[%s423_s3 + $0x20] sm:$0xff]  ;;  %v160_v35 = vld [vmem:[%s423_s3 + $0x10] sm:$0xff]  ;;  %v159_v40 = vld [vmem:[%s423_s3 + $0x8] sm:$0xff]  ;;  %s219_s25 = sshll.u32 %s425_s5, 4  ;;  %s288_s26 = smov 8   ;;  %s220_s25 = int_to_ptr.hbm [resolvable:$true] %s219_s25 }
   0x7   :  { %182 = vmatpush.msra.mxu1 %v164_v18  ;;  %242 = vmatpush.msra.mxu2 %v164_v18  ;;  %v158_v42 = vld [vmem:[%s423_s3] sm:$0xff] }
   0x8   :  { %60 = vmatpush.msra.mxu0 %v30_v3  ;;  %240 = vmatpush.msra.mxu3 %v30_v3 }
   0x9   :  { %231 = vmatmul.msk.f32.vlgmr.msra.gmra.mxu0 %vm25_vm0, %v28_v4  ;;  %232 = vmatmul.msk.f32.vlgmr.msra.gmra.mxu3 %vm25_vm0, %v29_v5 }
   0xa   :  { %183 = vmatpush.msra.mxu1 %v163_v22  ;;  %243 = vmatpush.msra.mxu2 %v163_v22 }
   0xc   :  { %184 = vmatpush.msra.mxu1 %v162_v26  ;;  %244 = vmatpush.msra.mxu2 %v162_v26 }
   0xe   :  { %185 = vmatpush.msra.mxu1 %v161_v31  ;;  %245 = vmatpush.msra.mxu2 %v161_v31 }
  0x10   :  { %186 = vmatpush.msra.mxu1 %v160_v35  ;;  %246 = vmatpush.msra.mxu2 %v160_v35 }
  0x12   :  { %187 = vmatpush.msra.mxu1 %v159_v40  ;;  %247 = vmatpush.msra.mxu2 %v159_v40  ;;  %v157_v40 = vld [vmem:[#allocation2 + $0x8] sm:$0xff] }
  0x14   :  { %188 = vmatpush.msra.mxu1 %v158_v42  ;;  %248 = vmatpush.msra.mxu2 %v158_v42 }
  0x86   :  { %v62_v7 = vpop.f32.mrf.mxu0 }
  0x87   :  { %v342_v8 = vadd.f32 %v253_v6, %v62_v7 }
  0x89   :  { %v345_v9 = vmul.f32 0.70710677, %v342_v8 }
  0x8b   :  { %v72_v10 = vmul.f32 %v345_v9, %v345_v9 }
  0x8c   :  { %v65_v11 = vpop.f32.mrf.mxu3 }
  0x8d   :  { %v349_v12 = vmin.f32 %v72_v10, 16.0  ;;  %v351_v13 = vadd.f32 %v253_v6, %v65_v11 }
  0x8f   :  { %v74_v15 = vmul.f32 2.1237322e-06, %v349_v12  ;;  %v85_v16 = vmul.f32 3.8918573e-05, %v349_v12  ;;  %v359_v17 = vmul.f32 0.70710677, %v351_v13 }
  0x91   :  { %v75_v19 = vadd.f32 0.00028619796, %v74_v15  ;;  %v86_v20 = vadd.f32 0.001143296, %v85_v16  ;;  %v112_v21 = vmul.f32 %v359_v17, %v359_v17 }
  0x93   :  { %v76_v23 = vmul.f32 %v75_v19, %v349_v12  ;;  %v87_v24 = vmul.f32 %v86_v20, %v349_v12  ;;  %v371_v25 = vmin.f32 %v112_v21, 16.0 }
  0x95   :  { %v77_v27 = vadd.f32 0.0036580483, %v76_v23  ;;  %v88_v28 = vadd.f32 0.014752088, %v87_v24  ;;  %v114_v29 = vmul.f32 2.1237322e-06, %v371_v25 }
  0x96   :  { %v125_v30 = vmul.f32 3.8918573e-05, %v371_v25 }
  0x97   :  { %v89_v32 = vmul.f32 %v88_v28, %v349_v12  ;;  %v115_v33 = vadd.f32 0.00028619796, %v114_v29  ;;  %v78_v37 = vmul.f32 %v77_v27, %v349_v12  ;;  %v68_v27 = vmul.f32 0.5, %v342_v8 }
  0x98   :  { %v126_v34 = vadd.f32 0.001143296, %v125_v30 }
  0x99   :  { %v90_v36 = vadd.f32 0.112945676, %v89_v32  ;;  %v116_v38 = vmul.f32 %v115_v33, %v371_v25  ;;  %v79_v46 = vadd.f32 0.05243302, %v78_v37  ;;  %v156_v37 = vld [vmem:[#allocation2] sm:$0xff] }
  0x9a   :  { %v127_v39 = vmul.f32 %v126_v34, %v371_v25  ;;  %v69_v34 = vmul.f32 0.5, %v351_v13 }
  0x9b   :  { %v91_v41 = vmul.f32 %v90_v36, %v349_v12  ;;  %v117_v45 = vadd.f32 0.0036580483, %v116_v38  ;;  %v80_v52 = vmul.f32 %v79_v46, %v349_v12 }
  0x9c   :  { %v128_v43 = vadd.f32 0.014752088, %v127_v39 }
  0x9d   :  { %v92_v44 = vadd.f32 0.4994258, %v91_v41  ;;  %v118_v51 = vmul.f32 %v117_v45, %v371_v25  ;;  %v81_v57 = vadd.f32 0.18741608, %v80_v52 }
  0x9e   :  { %v129_v47 = vmul.f32 %v128_v43, %v371_v25 }
  0x9f   :  { %v93_v48 = vmul.f32 %v92_v44, %v349_v12  ;;  %v119_v55 = vadd.f32 0.05243302, %v118_v51  ;;  %v82_v62 = vmul.f32 %v81_v57, %v349_v12 }
  0xa0   :  { %v130_v49 = vadd.f32 0.112945676, %v129_v47 }
  0xa1   :  { %v94_v50 = vadd.f32 1.0, %v93_v48  ;;  %v120_v61 = vmul.f32 %v119_v55, %v371_v25  ;;  %v83_v3 = vadd.f32 1.1283791, %v82_v62 }
  0xa2   :  { %v131_v53 = vmul.f32 %v130_v49, %v371_v25 }
  0xa3   :  { %255 = vrcp.f32 %v94_v50  ;;  %v106_v1 = vand.u32 2147483648, %v94_v50  ;;  %v121_v2 = vadd.f32 0.18741608, %v120_v61  ;;  %v104_v5 = vand.u32 2147483647, %v94_v50 }
  0xa4   :  { %v132_v54 = vadd.f32 0.4994258, %v131_v53  ;;  %vm100_vm2 = vweird.f32 %v94_v50  ;;  %v84_v15 = vmul.f32 %v83_v3, %v345_v9 }
  0xa5   :  { %v107_v10 = vor.u32 1.1754944e-38, %v106_v1  ;;  %v122_v11 = vmul.f32 %v121_v2, %v371_v25  ;;  %vm105_vm4 = vcmp.eq.f32.partialorder %v104_v5, 8.507059e+37 }
  0xa6   :  { %v133_v58 = vmul.f32 %v132_v54, %v371_v25 }
  0xa7   :  { %v123_v21 = vadd.f32 1.1283791, %v122_v11 }
  0xa8   :  { %v134_v59 = vadd.f32 1.0, %v133_v58 }
  0xa9   :  { %v256_v60 = vpop.eup %255  ;;  %v124_v9 = vmul.f32 %v123_v21, %v359_v17  ;;  %v254_v17 = vld [vmem:[%s424_s4] ss:$0 sm:$0xff]  ;;  %s287_s4 = smov 128  }
  0xaa   :  { %v96_v63 = vmul.f32 %v256_v60, %v94_v50  ;;  %257 = vrcp.f32 %v134_v59  ;;  %vm101_vm1 = vweird.f32 %v256_v60  ;;  %v146_v20 = vand.u32 2147483648, %v134_v59 }
  0xab   :  { %vm102_vm3 = vmor %vm100_vm2, %vm101_vm1  ;;  %v144_v23 = vand.u32 2147483647, %v134_v59  ;;  %vm140_vm6 = vweird.f32 %v134_v59 }
  0xac   :  { %v97_v0 = vsub.f32 1.0, %v96_v63  ;;  %v147_v25 = vor.u32 1.1754944e-38, %v146_v20 }
  0xad   :  { %vm145_vm8 = vcmp.eq.f32.partialorder %v144_v23, 8.507059e+37 }
  0xae   :  { %v98_v4 = vmul.f32 %v256_v60, %v97_v0 }
  0xb0   :  { %v258_v6 = vpop.eup %257  ;;  %v99_v7 = vadd.f32 %v256_v60, %v98_v4 }
  0xb1   :  { %v136_v14 = vmul.f32 %v258_v6, %v134_v59  ;;  %vm141_vm5 = vweird.f32 %v258_v6 }
  0xb2   :  { %v103_v12 = vsel %vm102_vm3, %v256_v60, %v99_v7  ;;  %vm142_vm7 = vmor %vm140_vm6, %vm141_vm5 }
  0xb3   :  { %v108_v16 = vsel %vm105_vm4, %v107_v10, %v103_v12  ;;  %v137_v18 = vsub.f32 1.0, %v136_v14 }
  0xb4   :  { %v109_v19 = vmul.f32 %v108_v16, %v84_v15 }
  0xb5   :  { %v138_v22 = vmul.f32 %v258_v6, %v137_v18 }
  0xb6   :  { %v233_v24 = vclamps-f32 %v109_v19, 1.0 }
  0xb7   :  { %v139_v26 = vadd.f32 %v258_v6, %v138_v22 }
  0xb8   :  { %v152_v28 = vadd.f32 1.0, %v233_v24 }
  0xb9   :  { %v143_v29 = vsel %vm142_vm7, %v258_v6, %v139_v26 }
  0xba   :  { %v148_v30 = vsel %vm145_vm8, %v147_v25, %v143_v29  ;;  %v154_v31 = vmul.f32 %v152_v28, %v68_v27 }
  0xbb   :  { %v149_v32 = vmul.f32 %v148_v30, %v124_v9 }
  0xbc   :  { %235 = vmatmul.msk.f32.vlgmr.msra.gmra.mxu1 %vm166_vm9, %v154_v31 }
  0xbd   :  { %v234_v33 = vclamps-f32 %v149_v32, 1.0 }
  0xbf   :  { %v153_v35 = vadd.f32 1.0, %v234_v33 }
  0xc1   :  { %v155_v36 = vmul.f32 %v153_v35, %v69_v34 }
  0xc3   :  { %236 = vmatmul.msk.f32.vlgmr.msra.gmra.mxu2 %vm166_vm9, %v155_v36 }
 0x139   :  { %v190_v8 = vpop.f32.mrf.mxu1 }
 0x13a   :  { %v196_v38 = vadd.f32 %v190_v8, %v156_v37 }
 0x13c   :  { %198 = vst.msk [vmem:[#allocation2] sm:$0xff] %vm25_vm0, %v196_v38 }
 0x143   :  { %v203_v39 = vld [vmem:[#allocation2] sm:$0xff] }
 0x144   :  { %v209_v41 = vadd.f32 %v254_v17, %v203_v39 }
 0x146   :  { %v193_v42 = vpop.f32.mrf.mxu2  ;;  %211 = vst.msk [vmem:[#allocation3] sm:$0xff] %vm25_vm0, %v209_v41 }
 0x147   :  { %v197_v43 = vadd.f32 %v193_v42, %v157_v40 }
 0x149   :  { %199 = vst.msk [vmem:[#allocation2 + $0x8] sm:$0xff] %vm25_vm0, %v197_v43 }
 0x150   :  { %v204_v13 = vld [vmem:[#allocation2 + $0x8] sm:$0xff] }
 0x151   :  { %v210_v44 = vadd.f32 %v254_v17, %v204_v13 }
 0x153   :  { %212 = vst.msk [vmem:[#allocation3 + $0x8] sm:$0xff] %vm25_vm0, %v210_v44 }
 0x154   :  { %225 = dma.vmem_to_hbm [thread:$0]  %s218_s22, 256, %s220_s25, [#allocation4], %s287_s4, %s287_s4, %s288_s26  }
 0x155   :  { %283 = dma.done.wait [#allocation4], 256  }
 0x156   :  { %284 = vsyncadd [#allocation4], 4294967040 }
 0x157   :  { %230 = vsyncpa [#allocation4], 1 }

</bundles_post_ra>
